<compile_context>
chip_gen: v6e
topology: v6e:2x2x1
jax: 0.10.0
libtpu: 0.0.40
codegen_flags: <defaults>
</compile_context>

<pallas_src>
import functools
import math

import jax
import jax.numpy as jnp
from jax.experimental import pallas as pl
from jax.experimental.pallas import tpu as pltpu


# -------------------------- RMAC region geometry (static) --------------------

def rmac_rows(H, W, L=(3,)):
    """RMAC region grid as a list of rows: (i, wl, (j0, j1, ...)), output order."""
    ovr = 0.4
    steps = (2, 3, 4, 5, 6, 7)
    w = min(W, H)
    vals = []
    for s in steps:
        b = (max(H, W) - w) / (s - 1)
        vals.append(abs((w * w - w * b) / (w * w) - ovr))
    idx = min(range(len(vals)), key=lambda k: vals[k])   # first min, like torch.min
    Wd, Hd = 0, 0
    if H < W:
        Wd = idx + 1
    elif H > W:
        Hd = idx + 1

    rows = []
    for l in L:
        wl = math.floor(2 * w / (l + 1))
        if wl <= 0:
            continue
        wl2 = math.floor(wl / 2 - 1)
        b = 0.0 if (l + Wd) == 1 else (W - wl) / (l + Wd - 1)
        cenW = [int(math.floor(wl2 + k * b) - wl2) for k in range(l - 1 + Wd + 1)]
        b = 0.0 if (l + Hd) == 1 else (H - wl) / (l + Hd - 1)
        cenH = [int(math.floor(wl2 + k * b) - wl2) for k in range(l - 1 + Hd + 1)]
        for i in cenH:
            rows.append((i, wl, tuple(cenW)))
    return rows


_REDUCERS = {"min": jnp.min, "max": jnp.max, "sum": jnp.sum,
             "mean": jnp.mean, "prod": jnp.prod}


# ------------------------------ Pallas kernel --------------------------------

def rmac_kernel(x_ref, out_ref, *, rows, reduction, eps):
    """Fused RMAC pooling + L2 normalize (+ optional reduction) for one image.

    x_ref  : (1, H, W, C) channels-last feature map (C on the lane axis)
    out_ref: (1, R, C) if reduction is None, else (1, 1, C)
    """
    pooled = []
    for (i, wl, js) in rows:
        # Shared H-window max for this row of regions: (W, C), running max so the
        # live set stays small (a few vregs) instead of loading the whole block.
        row = x_ref[0, i, :, :]
        for di in range(1, wl):
            row = jnp.maximum(row, x_ref[0, i + di, :, :])
        for j in js:
            # W-window max -> (1, C), lane-dense region descriptor.
            pooled.append(jnp.max(row[j:j + wl, :], axis=0, keepdims=True))
    v = jnp.concatenate(pooled, axis=0)                      # (R, C)

    # L2-normalize each region vector over channels (lane-axis reduction).
    norm = jnp.sqrt(jnp.sum(v * v, axis=-1, keepdims=True))
    v = v / jnp.maximum(norm, eps)

    if reduction is None:
        out_ref[0] = v
    else:
        u = _REDUCERS[reduction](v, axis=0, keepdims=True)   # (1, C)
        n2 = jnp.sqrt(jnp.sum(u * u, axis=-1, keepdims=True))
        out_ref[0] = u / jnp.maximum(n2, eps)


# -------------------------------- Wrapper ------------------------------------

def resnet50_rmac_forward(feat_nchw, L=(3,), reduction=None, eps=1e-12):
    """RMAC head forward: [N, C, H, W] backbone features -> [N, C, R] (or [N, C])."""
    if reduction not in ("min", "max", "sum", "mean", "prod"):
        reduction = None
    N, C, H, W = feat_nchw.shape
    rows = rmac_rows(H, W, L)
    R = sum(len(js) for (_, _, js) in rows)

    # Channels-last so C maps to the 128-lane axis inside the kernel (lane-dense).
    x_nhwc = jnp.transpose(feat_nchw, (0, 2, 3, 1)).astype(jnp.float32)

    r_out = R if reduction is None else 1
    out = pl.pallas_call(
        functools.partial(rmac_kernel, rows=rows, reduction=reduction, eps=eps),
        out_shape=jax.ShapeDtypeStruct((N, r_out, C), jnp.float32),
        grid=(N,),
        in_specs=[pl.BlockSpec((1, H, W, C), lambda n: (n, 0, 0, 0))],
        out_specs=pl.BlockSpec((1, r_out, C), lambda n: (n, 0, 0)),
        compiler_params=pltpu.CompilerParams(
            dimension_semantics=("parallel",)),
    )(x_nhwc)

    if reduction is None:
        # Match the PyTorch output layout: 'n c h w -> n c (h w)' == (N, C, R).
        return jnp.transpose(out, (0, 2, 1))
    return out[:, 0, :]                                      # (N, C)


# ---------------------------- Pure-JAX reference -----------------------------

def rmac_reference(feat_nchw, L=(3,), reduction=None, eps=1e-12):
    N, C, H, W = feat_nchw.shape
    rows = rmac_rows(H, W, L)
    pooled = []
    for (i, wl, js) in rows:
        for j in js:
            pooled.append(jnp.max(feat_nchw[:, :, i:i + wl, j:j + wl], axis=(2, 3)))
    v = jnp.stack(pooled, axis=2)                            # (N, C, R)
    norm = jnp.sqrt(jnp.sum(v * v, axis=1, keepdims=True))
    v = v / jnp.maximum(norm, eps)
    if reduction is not None:
        v = _REDUCERS[reduction](v, axis=2)                  # (N, C)
        n2 = jnp.sqrt(jnp.sum(v * v, axis=1, keepdims=True))
        v = v / jnp.maximum(n2, eps)
    return v


# ---------------------------------- Main --------------------------------------

if __name__ == "__main__":
    # Stand-in for a (downsized) ResNet50 C5 feature map.
    N, C, H, W = 2, 256, 16, 16
    key = jax.random.PRNGKey(0)
    feats = jax.random.normal(key, (N, C, H, W), jnp.float32)

    # Default path: reduction=None -> [N, C, R]
    out = jax.block_until_ready(resnet50_rmac_forward(feats, reduction=None))
    ref = rmac_reference(feats, reduction=None)
    R = ref.shape[-1]
    assert out.shape == (N, C, R), out.shape
    assert jnp.allclose(out, ref, rtol=1e-4, atol=1e-5), (
        f"max abs diff {jnp.max(jnp.abs(out - ref))}")

    # Reduced path: reduction='mean' -> [N, C]
    out_m = jax.block_until_ready(resnet50_rmac_forward(feats, reduction="mean"))
    ref_m = rmac_reference(feats, reduction="mean")
    assert out_m.shape == (N, C), out_m.shape
    assert jnp.allclose(out_m, ref_m, rtol=1e-4, atol=1e-5), (
        f"max abs diff {jnp.max(jnp.abs(out_m - ref_m))}")

    print("KERNEL_OK")
</pallas_src>

<mosaic_0001>
module attributes {stable_mosaic.version = 11 : i64} {
  func.func @rmac_kernel(%arg0: i32, %arg1: memref<1x16x16x256xf32, #tpu.memory_space<vmem>>, %arg2: memref<1x9x256xf32, #tpu.memory_space<vmem>>) attributes {dimension_semantics = [#tpu.dimension_semantics<parallel>], iteration_bounds = array<i64: 2>, scalar_prefetch = 0 : i64, scratch_operands = 0 : i64, tpu.core_type = #tpu.core_type<tc>, window_params = [{transform_indices = @transform_0, window_bounds = array<i64: 1, 16, 16, 256>}, {transform_indices = @transform_1, window_bounds = array<i64: 1, 9, 256>}]} {
    %c0 = arith.constant 0 : index
    %c0_0 = arith.constant 0 : index
    %c0_1 = arith.constant 0 : index
    %c0_2 = arith.constant 0 : index
    %0 = vector.load %arg1[%c0, %c0_0, %c0_1, %c0_2] : memref<1x16x16x256xf32, #tpu.memory_space<vmem>>, vector<1x1x16x256xf32>
    %1 = vector.shape_cast %0 : vector<1x1x16x256xf32> to vector<16x256xf32>
    %c0_3 = arith.constant 0 : index
    %c1 = arith.constant 1 : index
    %c0_4 = arith.constant 0 : index
    %c0_5 = arith.constant 0 : index
    %2 = vector.load %arg1[%c0_3, %c1, %c0_4, %c0_5] : memref<1x16x16x256xf32, #tpu.memory_space<vmem>>, vector<1x1x16x256xf32>
    %3 = vector.shape_cast %2 : vector<1x1x16x256xf32> to vector<16x256xf32>
    %4 = arith.maximumf %1, %3 : vector<16x256xf32>
    %c0_6 = arith.constant 0 : index
    %c2 = arith.constant 2 : index
    %c0_7 = arith.constant 0 : index
    %c0_8 = arith.constant 0 : index
    %5 = vector.load %arg1[%c0_6, %c2, %c0_7, %c0_8] : memref<1x16x16x256xf32, #tpu.memory_space<vmem>>, vector<1x1x16x256xf32>
    %6 = vector.shape_cast %5 : vector<1x1x16x256xf32> to vector<16x256xf32>
    %7 = arith.maximumf %4, %6 : vector<16x256xf32>
    %c0_9 = arith.constant 0 : index
    %c3 = arith.constant 3 : index
    %c0_10 = arith.constant 0 : index
    %c0_11 = arith.constant 0 : index
    %8 = vector.load %arg1[%c0_9, %c3, %c0_10, %c0_11] : memref<1x16x16x256xf32, #tpu.memory_space<vmem>>, vector<1x1x16x256xf32>
    %9 = vector.shape_cast %8 : vector<1x1x16x256xf32> to vector<16x256xf32>
    %10 = arith.maximumf %7, %9 : vector<16x256xf32>
    %c0_12 = arith.constant 0 : index
    %c4 = arith.constant 4 : index
    %c0_13 = arith.constant 0 : index
    %c0_14 = arith.constant 0 : index
    %11 = vector.load %arg1[%c0_12, %c4, %c0_13, %c0_14] : memref<1x16x16x256xf32, #tpu.memory_space<vmem>>, vector<1x1x16x256xf32>
    %12 = vector.shape_cast %11 : vector<1x1x16x256xf32> to vector<16x256xf32>
    %13 = arith.maximumf %10, %12 : vector<16x256xf32>
    %c0_15 = arith.constant 0 : index
    %c5 = arith.constant 5 : index
    %c0_16 = arith.constant 0 : index
    %c0_17 = arith.constant 0 : index
    %14 = vector.load %arg1[%c0_15, %c5, %c0_16, %c0_17] : memref<1x16x16x256xf32, #tpu.memory_space<vmem>>, vector<1x1x16x256xf32>
    %15 = vector.shape_cast %14 : vector<1x1x16x256xf32> to vector<16x256xf32>
    %16 = arith.maximumf %13, %15 : vector<16x256xf32>
    %c0_18 = arith.constant 0 : index
    %c6 = arith.constant 6 : index
    %c0_19 = arith.constant 0 : index
    %c0_20 = arith.constant 0 : index
    %17 = vector.load %arg1[%c0_18, %c6, %c0_19, %c0_20] : memref<1x16x16x256xf32, #tpu.memory_space<vmem>>, vector<1x1x16x256xf32>
    %18 = vector.shape_cast %17 : vector<1x1x16x256xf32> to vector<16x256xf32>
    %19 = arith.maximumf %16, %18 : vector<16x256xf32>
    %c0_21 = arith.constant 0 : index
    %c7 = arith.constant 7 : index
    %c0_22 = arith.constant 0 : index
    %c0_23 = arith.constant 0 : index
    %20 = vector.load %arg1[%c0_21, %c7, %c0_22, %c0_23] : memref<1x16x16x256xf32, #tpu.memory_space<vmem>>, vector<1x1x16x256xf32>
    %21 = vector.shape_cast %20 : vector<1x1x16x256xf32> to vector<16x256xf32>
    %22 = arith.maximumf %19, %21 : vector<16x256xf32>
    %23 = vector.extract_strided_slice %22 {offsets = [0, 0], sizes = [8, 256], strides = [1, 1]} : vector<16x256xf32> to vector<8x256xf32>
    %cst = arith.constant dense<0xFF800000> : vector<256xf32>
    %24 = vector.multi_reduction <maximumf>, %23, %cst [0] : vector<8x256xf32> to vector<256xf32>
    %25 = vector.shape_cast %24 : vector<256xf32> to vector<1x256xf32>
    %26 = vector.extract_strided_slice %22 {offsets = [4, 0], sizes = [8, 256], strides = [1, 1]} : vector<16x256xf32> to vector<8x256xf32>
    %cst_24 = arith.constant dense<0xFF800000> : vector<256xf32>
    %27 = vector.multi_reduction <maximumf>, %26, %cst_24 [0] : vector<8x256xf32> to vector<256xf32>
    %28 = vector.shape_cast %27 : vector<256xf32> to vector<1x256xf32>
    %29 = vector.extract_strided_slice %22 {offsets = [8, 0], sizes = [8, 256], strides = [1, 1]} : vector<16x256xf32> to vector<8x256xf32>
    %cst_25 = arith.constant dense<0xFF800000> : vector<256xf32>
    %30 = vector.multi_reduction <maximumf>, %29, %cst_25 [0] : vector<8x256xf32> to vector<256xf32>
    %31 = vector.shape_cast %30 : vector<256xf32> to vector<1x256xf32>
    %c0_26 = arith.constant 0 : index
    %c4_27 = arith.constant 4 : index
    %c0_28 = arith.constant 0 : index
    %c0_29 = arith.constant 0 : index
    %32 = vector.load %arg1[%c0_26, %c4_27, %c0_28, %c0_29] : memref<1x16x16x256xf32, #tpu.memory_space<vmem>>, vector<1x1x16x256xf32>
    %33 = vector.shape_cast %32 : vector<1x1x16x256xf32> to vector<16x256xf32>
    %c0_30 = arith.constant 0 : index
    %c5_31 = arith.constant 5 : index
    %c0_32 = arith.constant 0 : index
    %c0_33 = arith.constant 0 : index
    %34 = vector.load %arg1[%c0_30, %c5_31, %c0_32, %c0_33] : memref<1x16x16x256xf32, #tpu.memory_space<vmem>>, vector<1x1x16x256xf32>
    %35 = vector.shape_cast %34 : vector<1x1x16x256xf32> to vector<16x256xf32>
    %36 = arith.maximumf %33, %35 : vector<16x256xf32>
    %c0_34 = arith.constant 0 : index
    %c6_35 = arith.constant 6 : index
    %c0_36 = arith.constant 0 : index
    %c0_37 = arith.constant 0 : index
    %37 = vector.load %arg1[%c0_34, %c6_35, %c0_36, %c0_37] : memref<1x16x16x256xf32, #tpu.memory_space<vmem>>, vector<1x1x16x256xf32>
    %38 = vector.shape_cast %37 : vector<1x1x16x256xf32> to vector<16x256xf32>
    %39 = arith.maximumf %36, %38 : vector<16x256xf32>
    %c0_38 = arith.constant 0 : index
    %c7_39 = arith.constant 7 : index
    %c0_40 = arith.constant 0 : index
    %c0_41 = arith.constant 0 : index
    %40 = vector.load %arg1[%c0_38, %c7_39, %c0_40, %c0_41] : memref<1x16x16x256xf32, #tpu.memory_space<vmem>>, vector<1x1x16x256xf32>
    %41 = vector.shape_cast %40 : vector<1x1x16x256xf32> to vector<16x256xf32>
    %42 = arith.maximumf %39, %41 : vector<16x256xf32>
    %c0_42 = arith.constant 0 : index
    %c8 = arith.constant 8 : index
    %c0_43 = arith.constant 0 : index
    %c0_44 = arith.constant 0 : index
    %43 = vector.load %arg1[%c0_42, %c8, %c0_43, %c0_44] : memref<1x16x16x256xf32, #tpu.memory_space<vmem>>, vector<1x1x16x256xf32>
    %44 = vector.shape_cast %43 : vector<1x1x16x256xf32> to vector<16x256xf32>
    %45 = arith.maximumf %42, %44 : vector<16x256xf32>
    %c0_45 = arith.constant 0 : index
    %c9 = arith.constant 9 : index
    %c0_46 = arith.constant 0 : index
    %c0_47 = arith.constant 0 : index
    %46 = vector.load %arg1[%c0_45, %c9, %c0_46, %c0_47] : memref<1x16x16x256xf32, #tpu.memory_space<vmem>>, vector<1x1x16x256xf32>
    %47 = vector.shape_cast %46 : vector<1x1x16x256xf32> to vector<16x256xf32>
    %48 = arith.maximumf %45, %47 : vector<16x256xf32>
    %c0_48 = arith.constant 0 : index
    %c10 = arith.constant 10 : index
    %c0_49 = arith.constant 0 : index
    %c0_50 = arith.constant 0 : index
    %49 = vector.load %arg1[%c0_48, %c10, %c0_49, %c0_50] : memref<1x16x16x256xf32, #tpu.memory_space<vmem>>, vector<1x1x16x256xf32>
    %50 = vector.shape_cast %49 : vector<1x1x16x256xf32> to vector<16x256xf32>
    %51 = arith.maximumf %48, %50 : vector<16x256xf32>
    %c0_51 = arith.constant 0 : index
    %c11 = arith.constant 11 : index
    %c0_52 = arith.constant 0 : index
    %c0_53 = arith.constant 0 : index
    %52 = vector.load %arg1[%c0_51, %c11, %c0_52, %c0_53] : memref<1x16x16x256xf32, #tpu.memory_space<vmem>>, vector<1x1x16x256xf32>
    %53 = vector.shape_cast %52 : vector<1x1x16x256xf32> to vector<16x256xf32>
    %54 = arith.maximumf %51, %53 : vector<16x256xf32>
    %55 = vector.extract_strided_slice %54 {offsets = [0, 0], sizes = [8, 256], strides = [1, 1]} : vector<16x256xf32> to vector<8x256xf32>
    %cst_54 = arith.constant dense<0xFF800000> : vector<256xf32>
    %56 = vector.multi_reduction <maximumf>, %55, %cst_54 [0] : vector<8x256xf32> to vector<256xf32>
    %57 = vector.shape_cast %56 : vector<256xf32> to vector<1x256xf32>
    %58 = vector.extract_strided_slice %54 {offsets = [4, 0], sizes = [8, 256], strides = [1, 1]} : vector<16x256xf32> to vector<8x256xf32>
    %cst_55 = arith.constant dense<0xFF800000> : vector<256xf32>
    %59 = vector.multi_reduction <maximumf>, %58, %cst_55 [0] : vector<8x256xf32> to vector<256xf32>
    %60 = vector.shape_cast %59 : vector<256xf32> to vector<1x256xf32>
    %61 = vector.extract_strided_slice %54 {offsets = [8, 0], sizes = [8, 256], strides = [1, 1]} : vector<16x256xf32> to vector<8x256xf32>
    %cst_56 = arith.constant dense<0xFF800000> : vector<256xf32>
    %62 = vector.multi_reduction <maximumf>, %61, %cst_56 [0] : vector<8x256xf32> to vector<256xf32>
    %63 = vector.shape_cast %62 : vector<256xf32> to vector<1x256xf32>
    %c0_57 = arith.constant 0 : index
    %c8_58 = arith.constant 8 : index
    %c0_59 = arith.constant 0 : index
    %c0_60 = arith.constant 0 : index
    %64 = vector.load %arg1[%c0_57, %c8_58, %c0_59, %c0_60] : memref<1x16x16x256xf32, #tpu.memory_space<vmem>>, vector<1x1x16x256xf32>
    %65 = vector.shape_cast %64 : vector<1x1x16x256xf32> to vector<16x256xf32>
    %c0_61 = arith.constant 0 : index
    %c9_62 = arith.constant 9 : index
    %c0_63 = arith.constant 0 : index
    %c0_64 = arith.constant 0 : index
    %66 = vector.load %arg1[%c0_61, %c9_62, %c0_63, %c0_64] : memref<1x16x16x256xf32, #tpu.memory_space<vmem>>, vector<1x1x16x256xf32>
    %67 = vector.shape_cast %66 : vector<1x1x16x256xf32> to vector<16x256xf32>
    %68 = arith.maximumf %65, %67 : vector<16x256xf32>
    %c0_65 = arith.constant 0 : index
    %c10_66 = arith.constant 10 : index
    %c0_67 = arith.constant 0 : index
    %c0_68 = arith.constant 0 : index
    %69 = vector.load %arg1[%c0_65, %c10_66, %c0_67, %c0_68] : memref<1x16x16x256xf32, #tpu.memory_space<vmem>>, vector<1x1x16x256xf32>
    %70 = vector.shape_cast %69 : vector<1x1x16x256xf32> to vector<16x256xf32>
    %71 = arith.maximumf %68, %70 : vector<16x256xf32>
    %c0_69 = arith.constant 0 : index
    %c11_70 = arith.constant 11 : index
    %c0_71 = arith.constant 0 : index
    %c0_72 = arith.constant 0 : index
    %72 = vector.load %arg1[%c0_69, %c11_70, %c0_71, %c0_72] : memref<1x16x16x256xf32, #tpu.memory_space<vmem>>, vector<1x1x16x256xf32>
    %73 = vector.shape_cast %72 : vector<1x1x16x256xf32> to vector<16x256xf32>
    %74 = arith.maximumf %71, %73 : vector<16x256xf32>
    %c0_73 = arith.constant 0 : index
    %c12 = arith.constant 12 : index
    %c0_74 = arith.constant 0 : index
    %c0_75 = arith.constant 0 : index
    %75 = vector.load %arg1[%c0_73, %c12, %c0_74, %c0_75] : memref<1x16x16x256xf32, #tpu.memory_space<vmem>>, vector<1x1x16x256xf32>
    %76 = vector.shape_cast %75 : vector<1x1x16x256xf32> to vector<16x256xf32>
    %77 = arith.maximumf %74, %76 : vector<16x256xf32>
    %c0_76 = arith.constant 0 : index
    %c13 = arith.constant 13 : index
    %c0_77 = arith.constant 0 : index
    %c0_78 = arith.constant 0 : index
    %78 = vector.load %arg1[%c0_76, %c13, %c0_77, %c0_78] : memref<1x16x16x256xf32, #tpu.memory_space<vmem>>, vector<1x1x16x256xf32>
    %79 = vector.shape_cast %78 : vector<1x1x16x256xf32> to vector<16x256xf32>
    %80 = arith.maximumf %77, %79 : vector<16x256xf32>
    %c0_79 = arith.constant 0 : index
    %c14 = arith.constant 14 : index
    %c0_80 = arith.constant 0 : index
    %c0_81 = arith.constant 0 : index
    %81 = vector.load %arg1[%c0_79, %c14, %c0_80, %c0_81] : memref<1x16x16x256xf32, #tpu.memory_space<vmem>>, vector<1x1x16x256xf32>
    %82 = vector.shape_cast %81 : vector<1x1x16x256xf32> to vector<16x256xf32>
    %83 = arith.maximumf %80, %82 : vector<16x256xf32>
    %c0_82 = arith.constant 0 : index
    %c15 = arith.constant 15 : index
    %c0_83 = arith.constant 0 : index
    %c0_84 = arith.constant 0 : index
    %84 = vector.load %arg1[%c0_82, %c15, %c0_83, %c0_84] : memref<1x16x16x256xf32, #tpu.memory_space<vmem>>, vector<1x1x16x256xf32>
    %85 = vector.shape_cast %84 : vector<1x1x16x256xf32> to vector<16x256xf32>
    %86 = arith.maximumf %83, %85 : vector<16x256xf32>
    %87 = vector.extract_strided_slice %86 {offsets = [0, 0], sizes = [8, 256], strides = [1, 1]} : vector<16x256xf32> to vector<8x256xf32>
    %cst_85 = arith.constant dense<0xFF800000> : vector<256xf32>
    %88 = vector.multi_reduction <maximumf>, %87, %cst_85 [0] : vector<8x256xf32> to vector<256xf32>
    %89 = vector.shape_cast %88 : vector<256xf32> to vector<1x256xf32>
    %90 = vector.extract_strided_slice %86 {offsets = [4, 0], sizes = [8, 256], strides = [1, 1]} : vector<16x256xf32> to vector<8x256xf32>
    %cst_86 = arith.constant dense<0xFF800000> : vector<256xf32>
    %91 = vector.multi_reduction <maximumf>, %90, %cst_86 [0] : vector<8x256xf32> to vector<256xf32>
    %92 = vector.shape_cast %91 : vector<256xf32> to vector<1x256xf32>
    %93 = vector.extract_strided_slice %86 {offsets = [8, 0], sizes = [8, 256], strides = [1, 1]} : vector<16x256xf32> to vector<8x256xf32>
    %cst_87 = arith.constant dense<0xFF800000> : vector<256xf32>
    %94 = vector.multi_reduction <maximumf>, %93, %cst_87 [0] : vector<8x256xf32> to vector<256xf32>
    %95 = vector.shape_cast %94 : vector<256xf32> to vector<1x256xf32>
    %96 = tpu.concatenate %25, %28, %31, %57, %60, %63, %89, %92, %95 in 0 : vector<1x256xf32>, vector<1x256xf32>, vector<1x256xf32>, vector<1x256xf32>, vector<1x256xf32>, vector<1x256xf32>, vector<1x256xf32>, vector<1x256xf32>, vector<1x256xf32> -> vector<9x256xf32>
    %97 = arith.mulf %96, %96 : vector<9x256xf32>
    %cst_88 = arith.constant dense<0.000000e+00> : vector<9xf32>
    %98 = vector.multi_reduction <add>, %97, %cst_88 [1] : vector<9x256xf32> to vector<9xf32>
    %99 = vector.shape_cast %98 : vector<9xf32> to vector<9x1xf32>
    %100 = math.sqrt %99 : vector<9x1xf32>
    %cst_89 = arith.constant 9.99999996E-13 : f32
    %101 = vector.broadcast %cst_89 : f32 to vector<9x1xf32>
    %102 = arith.maximumf %100, %101 : vector<9x1xf32>
    %103 = vector.broadcast %102 : vector<9x1xf32> to vector<9x256xf32>
    %104 = arith.divf %96, %103 : vector<9x256xf32>
    %c0_90 = arith.constant 0 : index
    %c0_91 = arith.constant 0 : index
    %c0_92 = arith.constant 0 : index
    %105 = vector.load %arg2[%c0_90, %c0_91, %c0_92] : memref<1x9x256xf32, #tpu.memory_space<vmem>>, vector<1x9x256xf32>
    %106 = vector.shape_cast %105 : vector<1x9x256xf32> to vector<9x256xf32>
    %107 = vector.shape_cast %104 : vector<9x256xf32> to vector<1x9x256xf32>
    tpu.vector_store %arg2[%c0_90, %c0_91, %c0_92], %107 {strides = array<i32>} : memref<1x9x256xf32, #tpu.memory_space<vmem>>, vector<1x9x256xf32>,
    return
  }
  func.func @transform_0(%arg0: i32) -> (i32, i32, i32, i32) {
    %c0_i32 = arith.constant 0 : i32
    %c0_i32_0 = arith.constant 0 : i32
    %c0_i32_1 = arith.constant 0 : i32
    %c0_i32_2 = arith.constant 0 : i32
    return %arg0, %c0_i32, %c0_i32_0, %c0_i32_1 : i32, i32, i32, i32
  }
  func.func @transform_1(%arg0: i32) -> (i32, i32, i32) {
    %c0_i32 = arith.constant 0 : i32
    %c0_i32_0 = arith.constant 0 : i32
    %c0_i32_1 = arith.constant 0 : i32
    return %arg0, %c0_i32, %c0_i32_0 : i32, i32, i32
  }
}

</mosaic_0001>

<bundles_post_ra>
// kernel: tpu_custom_call.1
= control target key start
LH: loop header
LB: loop body
LE: loop exit
PB: predicated region body
PF: predicated region fallthrough
CT: control target
= control target key end

     0   :  { %6 = vsyncpa [#allocation3], 0  ;;  %s1006_s0 = inlined_call_operand.hbm [shape: f32[2,16,16,256], index: 0, kind: input, shape index: {}]   ;;  %s1007_s1 = inlined_call_operand.vmem [shape: f32[2,9,256], index: 1, kind: output, shape index: {}]  }
   0x1   :  { %8 = vsyncpa [#allocation3 + $0x1], 0  ;;  %s753_s6 = smov 0   ;;  %s755_s7 = smov 0  }
   0x2   :  { %s757_s8 = smov 0   ;;  %s759_s9 = smov 0  }
   0x3 LB: > { %s772_s10 = sadd.s32 4294967295, %s738_s9   ;;  %s775_s11 = sadd.s32 1, %s738_s9   ;;  %s738_s9 = sphi %s759_s9, %s1016_s9   ;;  %s734_s8 = sphi %s757_s8, %s1015_s8   ;;  %s730_s7 = sphi %s755_s7, %s1014_s7   ;;  %s726_s6 = sphi %s753_s6, %s1013_s6  }
   0x4   : > { %s18_s12 = ssub.s32 %s738_s9, %s775_s11  ;;  %s21_s13 = sadd.s32 1, %s734_s8 }
   0x5   : > { %p19_p0 = scmp.eq.s32.totalorder %s18_s12, 0  ;;  %p28_p1 = scmp.ne.s32.totalorder %s734_s8, %s730_s7 }
   0x6   : > { %p29_p2 = scmp.eq.s32.totalorder %s738_s9, 0  ;;  %p34_p3 = scmp.ne.s32.totalorder %s730_s7, %s726_s6 }
   0x7   : > { %s785_s14 = scalar_select %p19_p0, %s734_s8, %s21_s13  }
   0x8   : > { %p30_p4 = por %p29_p2, %p28_p1  ;;  %p35_p5 = scmp.eq.s32.totalorder %s772_s10, 0 }
   0x9   : > { %p633_p6 = scmp.lt.s32.totalorder %s738_s9, 2  ;;  %s84_s16 = sand.u32 1, %s734_s8  }
   0xa   : > { %p789_p7 = por %p35_p5, %p34_p3  ;;  %s556_s17 = sshll.u32 %s84_s16, 9 }
   0xb   : > { %s625_s18 = sshll.u32 %s738_s9, 13  ;;  %s88_s22 = scalar_lea.vmem [#allocation2], %s556_s17 }
   0xc   : > { %s1009_s15 = scalar_select %p789_p7, 1, 0 }
   0xd   : > { %s798_s21 = scalar_lea.hbm %s1006_s0, %s625_s18  ;;  %s95_s23 = sshll.u32 %s88_s22, 4  ;;  %s800_s23 = int_to_ptr.vmem [resolvable:$true] %s95_s23 }
   0xe   : > { %p802_p8 = pnand %p633_p6, %p30_p4  ;;  %s807_s25 = scalar_lea.sflag [#allocation3], %s84_s16 }
   0xf   : > { %s676_s26 = scalar_lea.hbm %s798_s21, 8192  ;;  %s681_s29 = scalar_lea.hbm %s1006_s0, 16384 }
  0x10   : > { %p677_p10 = scmp.ne.s32.totalorder %s798_s21, %s676_s26  ;;  %p678_p11 = pneg %p802_p8 }
  0x11   : > { %p682_p0 = scmp.lt.s32.totalorder %s798_s21, %s1006_s0  ;;  %p683_p1 = scmp.lt.s32.totalorder %s681_s29, %s676_s26 }
  0x12   : > { %p679_p12 = pnand %p678_p11, %p677_p10 }
  0x13   : > { %p684_p2 = por %p683_p1, %p682_p0 }
  0x14   : > { %p680_p13 = pneg %p679_p12 }
  0x16   : > { %p685_p3 = pnand %p684_p2, %p680_p13 }
  0x18   : > { %688 = shalt.err (!%p685_p3)
}
  0x19   : > { %s689_s3 = scalar_lea.vmem %s800_s23, 8192  ;;  %s740_s4 = smov [#allocation2]  }
  0x1a   : > { %p690_p4 = scmp.ne.s32.totalorder %s800_s23, %s689_s3  ;;  %s694_s5 = sshll.u32 %s740_s4, 4  ;;  %s695_s5 = int_to_ptr.vmem [resolvable:$false] %s694_s5 }
  0x1b   : > { %s696_s6 = scalar_lea.vmem %s695_s5, 16384  ;;  %p697_p10 = scmp.lt.s32.totalorder %s800_s23, %s695_s5 }
  0x1c   : > { %p692_p5 = pnand %p690_p4, %p678_p11  ;;  %p698_p12 = scmp.lt.s32.totalorder %s696_s6, %s689_s3 }
  0x1e   : > { %p693_p6 = pneg %p692_p5  ;;  %p699_p9 = por %p698_p12, %p697_p10 }
  0x20   : > { %p700_p7 = pnand %p699_p9, %p693_p6 }
  0x22   : > { %703 = shalt.err (!%p700_p7)
}
  0x23   : > { %s741_s12 = smov 256   ;;  %s742_s13 = smov 16  }
  0x24   : > { %632 = dma.hbm_to_vmem [thread:$0]  (!%p802_p8), %s798_s21, 8192, %s800_s23, %s807_s25, %s741_s12, %s741_s12, %s742_s13  }
  0x25   : > { %p103_p11 = scmp.lt.s32.totalorder %s738_s9, 3  ;;  %p1011_p13 = scmp.ge.s32.totalorder %s738_s9, 1 }
  0x27   : > { %p104_p0 = pnand %p1011_p13, %p103_p11 }
  0x28   : > { %s109_s16 = sand.u32 (!%p104_p0), 1, %s730_s7   ;;  %p1012_p7 = scmp.ne.s32.totalorder (!%p104_p0), %s1009_s15, 0 }
  0x29   : > { %107 = sbr.rel (%p104_p0) target bundleno = 295 (0x127), region = 24  ;;  %s560_s17 = sshll.u32 (!%p104_p0), %s109_s16, 9 }
  0x2a   : > { %s110_s18 = scalar_lea.sflag (!%p104_p0), [#allocation3], %s109_s16  ;;  %s832_s19 = scalar_lea.vmem (!%p104_p0), [#allocation2], %s560_s17 }
  0x2e   : > { %721 = dma.done.wait (%p1012_p7), %s110_s18, 8192  }
  0x2f   : > { %723 = vsyncadd (%p1012_p7), %s110_s18, 4294959104  ;;  %v137_v0 = vld [vmem:[%s832_s19] sm:$0xff]  ;;  %v138_v1 = vld [vmem:[%s832_s19 + $0x8] sm:$0xff]  ;;  %vm216_vm0 = vcmask 1047556   ;;  %vm218_vm1 = vcmask 1043456   ;;  %vm428_vm2 = vcmask 1040384  }
  0x30   : > { %v139_v2 = vld [vmem:[%s832_s19 + $0x10] sm:$0xff]  ;;  %v140_v3 = vld [vmem:[%s832_s19 + $0x18] sm:$0xff]  ;;  %v563_v4 = vld [vmem:[%s832_s19 + $0x20] sm:$0xff]  ;;  %vm431_vm3 = vcmask 1041408   ;;  %vm434_vm4 = vcmask 1042432   ;;  %vm439_vm5 = vcmask 1044480  }
  0x31   : > { %v564_v5 = vld [vmem:[%s832_s19 + $0x28] sm:$0xff]  ;;  %v565_v6 = vld [vmem:[%s832_s19 + $0x30] sm:$0xff]  ;;  %v566_v7 = vld [vmem:[%s832_s19 + $0x38] sm:$0xff]  ;;  %v146_v8 = vmax.f32 %v137_v0, %v563_v4  ;;  %vm442_vm6 = vcmask 1045504   ;;  %vm445_vm7 = vcmask 1046528   ;;  %p132_p8 = scmp.lt.s32.totalorder %s772_s10, 1 }
  0x32   : > { %v147_v9 = vmax.f32 %v138_v1, %v564_v5  ;;  %v567_v10 = vld [vmem:[%s832_s19 + $0x40] sm:$0xff]  ;;  %v148_v11 = vmax.f32 %v139_v2, %v565_v6  ;;  %v149_v12 = vmax.f32 %v140_v3, %v566_v7  ;;  %v568_v13 = vld [vmem:[%s832_s19 + $0x48] sm:$0xff]  ;;  %v569_v14 = vld [vmem:[%s832_s19 + $0x50] sm:$0xff] }
  0x33   : > { %v570_v15 = vld [vmem:[%s832_s19 + $0x58] sm:$0xff]  ;;  %v155_v16 = vmax.f32 %v146_v8, %v567_v10  ;;  %v571_v18 = vld [vmem:[%s832_s19 + $0x60] sm:$0xff]  ;;  %v572_v19 = vld [vmem:[%s832_s19 + $0x68] sm:$0xff]  ;;  %s1018_s10 = smov (!%p132_p8, %s772_s10), 1 }
  0x34   : > { %v156_v17 = vmax.f32 %v147_v9, %v568_v13  ;;  %v573_v20 = vld [vmem:[%s832_s19 + $0x70] sm:$0xff]  ;;  %v157_v21 = vmax.f32 %v148_v11, %v569_v14  ;;  %v158_v22 = vmax.f32 %v149_v12, %v570_v15  ;;  %v574_v23 = vld [vmem:[%s832_s19 + $0x78] sm:$0xff]  ;;  %v575_v24 = vld [vmem:[%s832_s19 + $0x80] sm:$0xff]  ;;  %s626_s9 = sshll.u32 %s1018_s10, 5 }
  0x35   : > { %v576_v25 = vld [vmem:[%s832_s19 + $0x88] sm:$0xff]  ;;  %v164_v26 = vmax.f32 %v155_v16, %v571_v18  ;;  %v577_v28 = vld [vmem:[%s832_s19 + $0x90] sm:$0xff]  ;;  %v578_v29 = vld [vmem:[%s832_s19 + $0x98] sm:$0xff]  ;;  %s136_s21 = scalar_lea.vmem %s1007_s1, %s626_s9 }
  0x36   : > { %v165_v27 = vmax.f32 %v156_v17, %v572_v19  ;;  %v579_v30 = vld [vmem:[%s832_s19 + $0xa0] sm:$0xff]  ;;  %v166_v31 = vmax.f32 %v157_v21, %v573_v20  ;;  %v167_v32 = vmax.f32 %v158_v22, %v574_v23  ;;  %v580_v33 = vld [vmem:[%s832_s19 + $0xa8] sm:$0xff]  ;;  %v581_v34 = vld [vmem:[%s832_s19 + $0xb0] sm:$0xff] }
  0x37   : > { %v582_v35 = vld [vmem:[%s832_s19 + $0xb8] sm:$0xff]  ;;  %v248_v36 = vmax.f32 %v575_v24, %v579_v30  ;;  %v173_v37 = vmax.f32 %v164_v26, %v575_v24  ;;  %v583_v39 = vld [vmem:[%s832_s19 + $0xc0] sm:$0xff]  ;;  %v584_v40 = vld [vmem:[%s832_s19 + $0xc8] sm:$0xff]  ;;  %v249_v42 = vmax.f32 %v576_v25, %v580_v33  ;;  %v250_v43 = vmax.f32 %v577_v28, %v581_v34 }
  0x38   : > { %v174_v38 = vmax.f32 %v165_v27, %v576_v25  ;;  %v585_v41 = vld [vmem:[%s832_s19 + $0xd0] sm:$0xff]  ;;  %v175_v44 = vmax.f32 %v166_v31, %v577_v28  ;;  %v176_v45 = vmax.f32 %v167_v32, %v578_v29  ;;  %v586_v46 = vld [vmem:[%s832_s19 + $0xd8] sm:$0xff]  ;;  %v587_v47 = vld [vmem:[%s832_s19 + $0xe0] sm:$0xff]  ;;  %v251_v49 = vmax.f32 %v578_v29, %v582_v35 }
  0x39   : > { %v588_v48 = vld [vmem:[%s832_s19 + $0xe8] sm:$0xff]  ;;  %v252_v50 = vmax.f32 %v248_v36, %v583_v39  ;;  %v182_v51 = vmax.f32 %v173_v37, %v579_v30  ;;  %v589_v53 = vld [vmem:[%s832_s19 + $0xf0] sm:$0xff]  ;;  %v590_v54 = vld [vmem:[%s832_s19 + $0xf8] sm:$0xff]  ;;  %v253_v55 = vmax.f32 %v249_v42, %v584_v40  ;;  %v254_v56 = vmax.f32 %v250_v43, %v585_v41 }
  0x3a   : > { %v183_v52 = vmax.f32 %v174_v38, %v580_v33  ;;  %v184_v57 = vmax.f32 %v175_v44, %v581_v34  ;;  %v185_v58 = vmax.f32 %v176_v45, %v582_v35  ;;  %v255_v59 = vmax.f32 %v251_v49, %v586_v46  ;;  %v871_v1 = vld [vmem:[%s832_s19 + $0x100] sm:$0xff]  ;;  %v874_v5 = vld [vmem:[%s832_s19 + $0x108] sm:$0xff]  ;;  %v877_v6 = vld [vmem:[%s832_s19 + $0x110] sm:$0xff] }
  0x3b   : > { %v256_v60 = vmax.f32 %v252_v50, %v587_v47  ;;  %v191_v61 = vmax.f32 %v182_v51, %v583_v39  ;;  %v257_v63 = vmax.f32 %v253_v55, %v588_v48  ;;  %v258_v0 = vmax.f32 %v254_v56, %v589_v53  ;;  %v881_v10 = vld [vmem:[%s832_s19 + $0x118] sm:$0xff]  ;;  %v886_v13 = vld [vmem:[%s832_s19 + $0x120] sm:$0xff]  ;;  %v895_v30 = vld [vmem:[%s832_s19 + $0x128] sm:$0xff] }
  0x3c   : > { %v192_v62 = vmax.f32 %v183_v52, %v584_v40  ;;  %v193_v2 = vmax.f32 %v184_v57, %v585_v41  ;;  %v194_v3 = vmax.f32 %v185_v58, %v586_v46  ;;  %v259_v4 = vmax.f32 %v255_v59, %v590_v54  ;;  %v898_v31 = vld [vmem:[%s832_s19 + $0x130] sm:$0xff]  ;;  %v903_v40 = vld [vmem:[%s832_s19 + $0x138] sm:$0xff]  ;;  %v906_v41 = vld [vmem:[%s832_s19 + $0x140] sm:$0xff] }
  0x3d   : > { %v265_v7 = vmax.f32 %v256_v60, %v871_v1  ;;  %v200_v8 = vmax.f32 %v191_v61, %v587_v47  ;;  %v266_v11 = vmax.f32 %v257_v63, %v874_v5  ;;  %v267_v12 = vmax.f32 %v258_v0, %v877_v6  ;;  %v600_v47 = vld [vmem:[%s832_s19 + $0x148] sm:$0xff]  ;;  %v916_v55 = vld [vmem:[%s832_s19 + $0x158] sm:$0xff]  ;;  %v919_v56 = vld [vmem:[%s832_s19 + $0x160] sm:$0xff] }
  0x3e   : > { %v201_v9 = vmax.f32 %v192_v62, %v588_v48  ;;  %v202_v14 = vmax.f32 %v193_v2, %v589_v53  ;;  %v203_v15 = vmax.f32 %v194_v3, %v590_v54  ;;  %v268_v16 = vmax.f32 %v259_v4, %v881_v10  ;;  %v912_v48 = vld [vmem:[%s832_s19 + $0x150] sm:$0xff]  ;;  %v924_v61 = vld [vmem:[%s832_s19 + $0x168] sm:$0xff]  ;;  %v930_v2 = vld [vmem:[%s832_s19 + $0x178] sm:$0xff] }
  0x3f   : > { %v274_v17 = vmax.f32 %v265_v7, %v886_v13  ;;  %v204_v18 = vrot.slane %v200_v8, 4  ;;  %v217_v20 = vsel %vm216_vm0, %v200_v8, -inf  ;;  %v275_v34 = vmax.f32 %v266_v11, %v895_v30  ;;  %v927_v62 = vld [vmem:[%s832_s19 + $0x170] sm:$0xff] }
  0x40   : > { %v210_v19 = vrot.slane %v201_v9, 4  ;;  %v227_v21 = vsel %vm216_vm0, %v201_v9, -inf  ;;  %v219_v22 = vsel %vm218_vm1, %v202_v14, -inf  ;;  %v228_v23 = vsel %vm218_vm1, %v203_v15, -inf }
  0x41   : > { %v236_v24 = vrot.slane %v202_v14, 4  ;;  %v242_v25 = vrot.slane %v203_v15, 4  ;;  %v205_v26 = vmax.f32 %v200_v8, %v204_v18  ;;  %v220_v28 = vmax.f32 %v217_v20, %v219_v22 }
  0x42   : > { %v211_v27 = vmax.f32 %v201_v9, %v210_v19  ;;  %v229_v29 = vmax.f32 %v227_v21, %v228_v23  ;;  %v276_v35 = vmax.f32 %v267_v12, %v898_v31  ;;  %v277_v43 = vmax.f32 %v268_v16, %v903_v40 }
  0x43   : > { %v237_v32 = vmax.f32 %v202_v14, %v236_v24  ;;  %v243_v33 = vmax.f32 %v203_v15, %v242_v25  ;;  %v206_v36 = vrot.slane %v205_v26, 2  ;;  %v221_v38 = vrot.slane %v220_v28, 4 }
  0x44   : > { %v212_v37 = vrot.slane %v211_v27, 2  ;;  %v230_v39 = vrot.slane %v229_v29, 4  ;;  %v283_v44 = vmax.f32 %v274_v17, %v906_v41  ;;  %v284_v51 = vmax.f32 %v275_v34, %v600_v47 }
  0x45   : > { %v238_v42 = vrot.slane %v237_v32, 2  ;;  %v222_v45 = vmax.f32 %v220_v28, %v221_v38  ;;  %v207_v49 = vmax.f32 %v205_v26, %v206_v36  ;;  %v244_v50 = vrot.slane %v243_v33, 2 }
  0x46   : > { %v231_v46 = vmax.f32 %v229_v29, %v230_v39  ;;  %v285_v52 = vmax.f32 %v276_v35, %v912_v48  ;;  %v213_v53 = vmax.f32 %v211_v27, %v212_v37  ;;  %v286_v57 = vmax.f32 %v277_v43, %v916_v55 }
  0x47   : > { %v239_v54 = vmax.f32 %v237_v32, %v238_v42  ;;  %v292_v58 = vmax.f32 %v283_v44, %v919_v56  ;;  %v223_v59 = vrot.slane %v222_v45, 2  ;;  %v208_v63 = vrot.slane %v207_v49, 1 }
  0x48   : > { %v232_v60 = vrot.slane %v231_v46, 2  ;;  %v245_v0 = vmax.f32 %v243_v33, %v244_v50  ;;  %v293_v3 = vmax.f32 %v284_v51, %v924_v61  ;;  %v294_v4 = vmax.f32 %v285_v52, %v927_v62 }
  0x49   : > { %v214_v7 = vrot.slane %v213_v53, 1  ;;  %v240_v8 = vrot.slane %v239_v54, 1  ;;  %v295_v9 = vmax.f32 %v286_v57, %v930_v2  ;;  %v296_v11 = vrot.slane %v292_v58, 4 }
  0x4a   : > { %v302_v12 = vrot.slane %v293_v3, 4  ;;  %v308_v14 = vsel %vm216_vm0, %v292_v58, -inf  ;;  %v309_v15 = vsel %vm218_vm1, %v294_v4, -inf  ;;  %v317_v16 = vsel %vm216_vm0, %v293_v3, -inf }
  0x4b   : > { %v224_v17 = vmax.f32 %v222_v45, %v223_v59  ;;  %v233_v18 = vmax.f32 %v231_v46, %v232_v60  ;;  %v297_v19 = vmax.f32 %v292_v58, %v296_v11  ;;  %v310_v20 = vmax.f32 %v308_v14, %v309_v15  ;;  %v613_v14 = vld [vmem:[%s832_s19 + $0x1b0] sm:$0xff] }
  0x4c   : > { %v303_v21 = vmax.f32 %v293_v3, %v302_v12  ;;  %v318_v22 = vsel %vm218_vm1, %v295_v9, -inf  ;;  %v326_v23 = vrot.slane %v294_v4, 4  ;;  %v332_v24 = vrot.slane %v295_v9, 4 }
  0x4d   : > { %v246_v25 = vrot.slane %v245_v0, 1  ;;  %v311_v26 = vrot.slane %v310_v20, 4  ;;  %v319_v27 = vmax.f32 %v317_v16, %v318_v22  ;;  %v338_v28 = vmax.f32 %v871_v1, %v886_v13 }
  0x4e   : > { %v298_v29 = vrot.slane %v297_v19, 2  ;;  %v304_v32 = vrot.slane %v303_v21, 2  ;;  %v327_v33 = vmax.f32 %v294_v4, %v326_v23  ;;  %v339_v34 = vmax.f32 %v874_v5, %v895_v30  ;;  %v617_v23 = vld [vmem:[%s832_s19 + $0x1d0] sm:$0xff] }
  0x4f   : > { %v312_v35 = vmax.f32 %v310_v20, %v311_v26  ;;  %v320_v36 = vrot.slane %v319_v27, 4  ;;  %v333_v37 = vmax.f32 %v295_v9, %v332_v24  ;;  %v340_v38 = vmax.f32 %v877_v6, %v898_v31  ;;  %v618_v24 = vld [vmem:[%s832_s19 + $0x1d8] sm:$0xff] }
  0x50   : > { %v209_v39 = vmax.f32 %v207_v49, %v208_v63  ;;  %v225_v42 = vrot.slane %v224_v17, 1  ;;  %v234_v43 = vrot.slane %v233_v18, 1  ;;  %v341_v44 = vmax.f32 %v881_v10, %v903_v40  ;;  %v609_v63 = vld [vmem:[%s832_s19 + $0x190] sm:$0xff] }
  0x51   : > { %v215_v1 = vmax.f32 %v213_v53, %v214_v7  ;;  %v313_v13 = vrot.slane %v312_v35, 2  ;;  %v321_v45 = vmax.f32 %v319_v27, %v320_v36  ;;  %v342_v5 = vmax.f32 %v338_v28, %v906_v41  ;;  %v607_v41 = vld [vmem:[%s832_s19 + $0x180] sm:$0xff]  ;;  %v622_v36 = vld [vmem:[%s832_s19 + $0x1f8] sm:$0xff] }
  0x52   : > { %v241_v30 = vmax.f32 %v239_v54, %v240_v8  ;;  %v299_v46 = vmax.f32 %v297_v19, %v298_v29  ;;  %v305_v50 = vmax.f32 %v303_v21, %v304_v32  ;;  %v343_v51 = vmax.f32 %v339_v34, %v600_v47  ;;  %v608_v54 = vld [vmem:[%s832_s19 + $0x188] sm:$0xff]  ;;  %v611_v7 = vld [vmem:[%s832_s19 + $0x1a0] sm:$0xff] }
  0x53   : > { %v322_v6 = vrot.slane %v321_v45, 2  ;;  %v328_v31 = vrot.slane %v327_v33, 2  ;;  %v334_v49 = vrot.slane %v333_v37, 2  ;;  %v344_v52 = vmax.f32 %v340_v38, %v912_v48  ;;  %v610_v48 = vld [vmem:[%s832_s19 + $0x198] sm:$0xff]  ;;  %v612_v8 = vld [vmem:[%s832_s19 + $0x1a8] sm:$0xff]  ;;  %v619_v29 = vld [vmem:[%s832_s19 + $0x1e0] sm:$0xff] }
  0x54   : > { %v226_v10 = vmax.f32 %v224_v17, %v225_v42  ;;  %v235_v40 = vmax.f32 %v233_v18, %v234_v43  ;;  %v247_v53 = vmax.f32 %v245_v0, %v246_v25  ;;  %v345_v57 = vmax.f32 %v341_v44, %v916_v55  ;;  %v615_v17 = vld [vmem:[%s832_s19 + $0x1c0] sm:$0xff]  ;;  %v616_v18 = vld [vmem:[%s832_s19 + $0x1c8] sm:$0xff] }
  0x55   : > { %v314_v58 = vmax.f32 %v312_v35, %v313_v13  ;;  %v323_v47 = vmax.f32 %v321_v45, %v322_v6  ;;  %v346_v59 = vmax.f32 %v342_v5, %v919_v56  ;;  %v347_v60 = vmax.f32 %v343_v51, %v924_v61  ;;  %v614_v61 = vld [vmem:[%s832_s19 + $0x1b8] sm:$0xff]  ;;  %v620_v32 = vld [vmem:[%s832_s19 + $0x1e8] sm:$0xff]  ;;  %v621_v35 = vld [vmem:[%s832_s19 + $0x1f0] sm:$0xff] }
  0x56   : > { %v300_v3 = vrot.slane %v299_v46, 1  ;;  %v306_v4 = vrot.slane %v305_v50, 1  ;;  %v348_v0 = vmax.f32 %v344_v52, %v927_v62  ;;  %v349_v55 = vmax.f32 %v345_v57, %v930_v2 }
  0x57   : > { %v329_v9 = vmax.f32 %v327_v33, %v328_v31  ;;  %v335_v11 = vmax.f32 %v333_v37, %v334_v49  ;;  %v355_v12 = vmax.f32 %v346_v59, %v607_v41  ;;  %v356_v56 = vmax.f32 %v347_v60, %v608_v54 }
  0x58   : > { %v357_v15 = vmax.f32 %v348_v0, %v609_v63  ;;  %v358_v16 = vmax.f32 %v349_v55, %v610_v48  ;;  %v429_v62 = vsel %vm428_vm2, %v209_v39, %v226_v10  ;;  %v430_v2 = vsel %vm428_vm2, %v215_v1, %v235_v40 }
  0x59   : > { %v315_v19 = vrot.slane %v314_v58, 1  ;;  %v324_v20 = vrot.slane %v323_v47, 1  ;;  %v364_v21 = vmax.f32 %v355_v12, %v611_v7  ;;  %v365_v22 = vmax.f32 %v356_v56, %v612_v8 }
  0x5a   : > { %v301_v25 = vmax.f32 %v299_v46, %v300_v3  ;;  %v307_v26 = vmax.f32 %v305_v50, %v306_v4  ;;  %v366_v27 = vmax.f32 %v357_v15, %v613_v14  ;;  %v367_v28 = vmax.f32 %v358_v16, %v614_v61 }
  0x5b   : > { %v373_v33 = vmax.f32 %v364_v21, %v615_v17  ;;  %v374_v34 = vmax.f32 %v365_v22, %v616_v18  ;;  %v432_v37 = vsel %vm431_vm3, %v429_v62, %v241_v30  ;;  %v433_v38 = vsel %vm431_vm3, %v430_v2, %v247_v53 }
  0x5c   : > { %v330_v39 = vrot.slane %v329_v9, 1  ;;  %v336_v42 = vrot.slane %v335_v11, 1  ;;  %v375_v43 = vmax.f32 %v366_v27, %v617_v23  ;;  %v376_v44 = vmax.f32 %v367_v28, %v618_v24 }
  0x5d   : > { %v316_v1 = vmax.f32 %v314_v58, %v315_v19  ;;  %v325_v13 = vmax.f32 %v323_v47, %v324_v20  ;;  %v382_v45 = vmax.f32 %v373_v33, %v619_v29  ;;  %v383_v5 = vmax.f32 %v374_v34, %v620_v32 }
  0x5e   : > { %v384_v46 = vmax.f32 %v375_v43, %v621_v35  ;;  %v385_v50 = vmax.f32 %v376_v44, %v622_v36  ;;  %v435_v51 = vsel %vm434_vm4, %v432_v37, %v301_v25  ;;  %v436_v6 = vsel %vm434_vm4, %v433_v38, %v307_v26 }
  0x5f   : > { %v386_v31 = vrot.slane %v382_v45, 4  ;;  %v392_v49 = vrot.slane %v383_v5, 4  ;;  %v398_v30 = vsel %vm216_vm0, %v382_v45, -inf  ;;  %v407_v52 = vsel %vm216_vm0, %v383_v5, -inf }
  0x60   : > { %v399_v10 = vsel %vm218_vm1, %v384_v46, -inf  ;;  %v408_v40 = vsel %vm218_vm1, %v385_v50, -inf  ;;  %v416_v53 = vrot.slane %v384_v46, 4  ;;  %v422_v57 = vrot.slane %v385_v50, 4 }
  0x61   : > { %v387_v41 = vmax.f32 %v382_v45, %v386_v31  ;;  %v393_v54 = vmax.f32 %v383_v5, %v392_v49  ;;  %v400_v58 = vmax.f32 %v398_v30, %v399_v10  ;;  %v409_v47 = vmax.f32 %v407_v52, %v408_v40 }
  0x62   : > { %v331_v59 = vmax.f32 %v329_v9, %v330_v39  ;;  %v337_v60 = vmax.f32 %v335_v11, %v336_v42  ;;  %v417_v63 = vmax.f32 %v384_v46, %v416_v53  ;;  %v423_v48 = vmax.f32 %v385_v50, %v422_v57 }
  0x63   : > { %v388_v3 = vrot.slane %v387_v41, 2  ;;  %v394_v4 = vrot.slane %v393_v54, 2  ;;  %v401_v0 = vrot.slane %v400_v58, 4  ;;  %v410_v55 = vrot.slane %v409_v47, 4 }
  0x64   : > { %v437_v7 = vsel %vm218_vm1, %v435_v51, %v316_v1  ;;  %v438_v8 = vsel %vm218_vm1, %v436_v6, %v325_v13  ;;  %v418_v12 = vrot.slane %v417_v63, 2  ;;  %v424_v56 = vrot.slane %v423_v48, 2 }
  0x65   : > { %v389_v14 = vmax.f32 %v387_v41, %v388_v3  ;;  %v395_v61 = vmax.f32 %v393_v54, %v394_v4  ;;  %v402_v15 = vmax.f32 %v400_v58, %v401_v0  ;;  %v411_v16 = vmax.f32 %v409_v47, %v410_v55 }
  0x66   : > { %v419_v17 = vmax.f32 %v417_v63, %v418_v12  ;;  %v425_v9 = vmax.f32 %v423_v48, %v424_v56  ;;  %v440_v19 = vsel %vm439_vm5, %v437_v7, %v331_v59  ;;  %v441_v20 = vsel %vm439_vm5, %v438_v8, %v337_v60 }
  0x67   : > { %v390_v11 = vrot.slane %v389_v14, 1  ;;  %v396_v18 = vrot.slane %v395_v61, 1  ;;  %v403_v62 = vrot.slane %v402_v15, 2  ;;  %v412_v2 = vrot.slane %v411_v16, 2 }
  0x68   : > { %v420_v21 = vrot.slane %v419_v17, 1  ;;  %v426_v22 = vrot.slane %v425_v9, 1 }
  0x69   : > { %v391_v23 = vmax.f32 %v389_v14, %v390_v11  ;;  %v397_v24 = vmax.f32 %v395_v61, %v396_v18  ;;  %v404_v25 = vmax.f32 %v402_v15, %v403_v62  ;;  %v413_v26 = vmax.f32 %v411_v16, %v412_v2 }
  0x6a   : > { %v421_v27 = vmax.f32 %v419_v17, %v420_v21  ;;  %v427_v28 = vmax.f32 %v425_v9, %v426_v22 }
  0x6b   : > { %v405_v29 = vrot.slane %v404_v25, 1  ;;  %v414_v32 = vrot.slane %v413_v26, 1  ;;  %v443_v33 = vsel %vm442_vm6, %v440_v19, %v391_v23  ;;  %v444_v34 = vsel %vm442_vm6, %v441_v20, %v397_v24 }
  0x6c   : > { %v450_v37 = vmul.f32 %v421_v27, %v421_v27  ;;  %v451_v38 = vmul.f32 %v427_v28, %v427_v28 }
  0x6d   : > { %v406_v35 = vmax.f32 %v404_v25, %v405_v29  ;;  %v415_v36 = vmax.f32 %v413_v26, %v414_v32 }
  0x6e   : > { %v455_v1 = vsel %vm428_vm2, %v450_v37, 0.0  ;;  %v456_v13 = vsel %vm428_vm2, %v451_v38, 0.0 }
  0x6f   : > { %v446_v39 = vsel %vm445_vm7, %v443_v33, %v406_v35  ;;  %v447_v42 = vsel %vm445_vm7, %v444_v34, %v415_v36  ;;  %v457_v5 = vadd.f32 %v456_v13, %v455_v1 }
  0x70   : > { %v448_v43 = vmul.f32 %v446_v39, %v446_v39  ;;  %v449_v44 = vmul.f32 %v447_v42, %v447_v42 }
  0x72   : > { %v452_v45 = vadd.f32 %v449_v44, %v448_v43 }
  0x74   : > { %453 = vadd.xlane.f32.xlu0 %v452_v45 }
  0x78   : > { %458 = vadd.xlane.f32.xlu0 %v457_v5 }
  0xfd   : > { %v454_v46 = vpop.xlane.xlu0 %453 }
  0xfe   : > { %668 = vrsqrt.f32 %v454_v46  ;;  %vm462_vm8 = vcmp.eq.f32.partialorder %v454_v46, inf  ;;  %v465_v31 = vand.u32 2147483648, %v454_v46  ;;  %vm464_vm9 = vcmp.eq.f32.partialorder %v454_v46, 0.0 }
 0x101   : > { %v459_v50 = vpop.xlane.xlu0 %458 }
 0x102   : > { %670 = vrsqrt.f32 %v459_v50  ;;  %vm469_vm10 = vcmp.eq.f32.partialorder %v459_v50, inf  ;;  %v472_v53 = vand.u32 2147483648, %v459_v50  ;;  %vm471_vm11 = vcmp.eq.f32.partialorder %v459_v50, 0.0 }
 0x10b   : > { %v669_v51 = vpop.eup %668 }
 0x10c   : > { %v461_v6 = vmul.f32 %v669_v51, %v454_v46 }
 0x10e   : > { %v463_v49 = vsel %vm462_vm8, %v454_v46, %v461_v6 }
 0x10f   : > { %v671_v30 = vpop.eup %670  ;;  %v466_v52 = vsel %vm464_vm9, %v465_v31, %v463_v49 }
 0x110   : > { %v468_v10 = vmul.f32 %v671_v30, %v459_v50  ;;  %v474_v40 = vmax.f32 %v466_v52, 1e-12 }
 0x112   : > { %v470_v57 = vsel %vm469_vm10, %v459_v50, %v468_v10  ;;  %672 = vrcp.f32 %v474_v40 }
 0x113   : > { %v473_v41 = vsel %vm471_vm11, %v472_v53, %v470_v57 }
 0x114   : > { %v475_v54 = vmax.f32 %v473_v41, 1e-12 }
 0x116   : > { %674 = vrcp.f32 %v475_v54 }
 0x11f   : > { %v673_v58 = vpop.eup %672 }
 0x120   : > { %v477_v47 = vmul.f32 %v673_v58, %v446_v39  ;;  %v478_v59 = vmul.f32 %v673_v58, %v447_v42 }
 0x122   : > { %482 = vst [vmem:[%s136_s21] sm:$0xff] %v477_v47  ;;  %483 = vst [vmem:[%s136_s21 + $0x8] sm:$0xff] %v478_v59 }
 0x123   : > { %v675_v60 = vpop.eup %674 }
 0x124   : > { %v480_v63 = vmul.f32 %v675_v60, %v421_v27  ;;  %v481_v48 = vmul.f32 %v675_v60, %v427_v28 }
 0x126   : > { %484 = vst [vmem:[%s136_s21 + $0x10] sm:$0x1] %v480_v63  ;;  %485 = vst [vmem:[%s136_s21 + $0x18] sm:$0x1] %v481_v48 }
 0x127 PF: > { %p11_p9 = scmp.ge.s32.totalorder %s775_s11, 4   ;;  %s1013_s6 = smov %s730_s7 }
 0x128   : > { %s1014_s7 = smov %s734_s8  ;;  %s1015_s8 = smov %s785_s14 }
 0x129   : > { %s1016_s9 = smov %s775_s11  ;;  %13 = sbr.rel (!%p11_p9) target bundleno = 3 (0x3), region = 79 }
 0x12e   :  { %507 = vsyncpa [#allocation3], 1 }
 0x12f   :  { %509 = vsyncpa [#allocation3 + $0x1], 1 }

</bundles_post_ra>
